<compile_context>
chip_gen: v5e
topology: v5e:2x2
jax: 0.10.0
libtpu: 0.0.40
codegen_flags: <defaults>
</compile_context>

<pallas_src>
import jax
import jax.numpy as jnp
from jax import lax
from jax.experimental import pallas as pl
from jax.experimental.pallas import tpu as pltpu


def _edge_score_kernel(src_ref, dst_ref, pT_ref, b_ref, out_ref):
    """One tile of `tile_e` edges, emitted transposed (lane-dense).

    src_ref, dst_ref : (1, tile_e) int32        endpoint node ids
    pT_ref           : (n_classes, 2N) f32      [P_src; P_dst]^T partial logits
    b_ref            : (n_classes, 1) f32       bias
    out_ref          : (n_classes, tile_e)      scores^T
    """
    two_n = pT_ref.shape[1]
    n_nodes = two_n // 2
    tile_e = src_ref.shape[1]

    # Transposed one-hot selector: row r of column e is 1 iff r == src[e]
    # (upper half) or r == dst[e] + N (lower half).  Exactly two 1.0s per
    # column, so  P^T @ onehot  ==  P_src[src] + P_dst[dst]  -- gather and
    # sum fused into a single MXU contraction with K = 2N.
    row = lax.broadcasted_iota(jnp.int32, (two_n, tile_e), 0)
    hit = (row == src_ref[...]) | (row == dst_ref[...] + n_nodes)
    onehot_t = jnp.where(hit, jnp.float32(1.0), jnp.float32(0.0))   # (2N, tile_e)

    scores_t = jnp.dot(pT_ref[...], onehot_t,
                       preferred_element_type=jnp.float32)           # (C, tile_e)
    out_ref[...] = (scores_t + b_ref[...]).astype(out_ref.dtype)


def hetero_mlp_predictor(h, src_idx, dst_idx, W, b, *, tile_e=512,
                         out_dtype=jnp.float32):
    """
    h       : (N, in_dims)            node features
    src_idx : (E,) int32              edge source node ids
    dst_idx : (E,) int32              edge destination node ids
    W       : (n_classes, 2*in_dims)  nn.Linear weight (PyTorch layout)
    b       : (n_classes,)            nn.Linear bias
    returns : (E, n_classes) edge scores in `out_dtype` (f32 default)
    """
    N, in_dims = h.shape
    n_classes = W.shape[0]
    E = src_idx.shape[0]

    # ---- one-time reassociated precompute (wrapper-side, per review) -----
    # concat([h_src, h_dst]) @ W.T == h_src @ W_src + h_dst @ W_dst, so the
    # per-node partial logits are computed once; bf16 MXU inputs, f32 accum.
    h_bf = h.astype(jnp.bfloat16)                                   # (N, in_dims)
    w_src = W[:, :in_dims].T.astype(jnp.bfloat16)                   # (in_dims, C)
    w_dst = W[:, in_dims:].T.astype(jnp.bfloat16)                   # (in_dims, C)
    p_src = jnp.dot(h_bf, w_src, preferred_element_type=jnp.float32)  # (N, C)
    p_dst = jnp.dot(h_bf, w_dst, preferred_element_type=jnp.float32)  # (N, C)
    p_t = jnp.concatenate([p_src, p_dst], axis=0).T                 # (C, 2N) f32
    p_t = p_t.astype(jnp.float32)
    b2d = b.reshape(n_classes, 1).astype(jnp.float32)

    # ---- pad edge list to a multiple of tile_e ----------------------------
    # (index 0 is a valid node; padded columns are sliced off before return)
    n_tiles = pl.cdiv(E, tile_e)
    e_pad = n_tiles * tile_e
    pad = e_pad - E
    src_p = jnp.pad(src_idx.astype(jnp.int32), (0, pad)).reshape(1, e_pad)
    dst_p = jnp.pad(dst_idx.astype(jnp.int32), (0, pad)).reshape(1, e_pad)

    out_itemsize = jnp.dtype(out_dtype).itemsize
    cost = pl.CostEstimate(
        flops=2 * e_pad * (2 * N) * n_classes,
        transcendentals=0,
        bytes_accessed=(2 * e_pad * 4                      # src/dst ids
                        + 2 * N * n_classes * 4            # P^T table
                        + e_pad * n_classes * out_itemsize),  # scores^T
    )

    out_t = pl.pallas_call(
        _edge_score_kernel,
        out_shape=jax.ShapeDtypeStruct((n_classes, e_pad), out_dtype),
        grid_spec=pltpu.PrefetchScalarGridSpec(
            num_scalar_prefetch=0,
            grid=(n_tiles,),
            in_specs=[
                pl.BlockSpec((1, tile_e), lambda i: (0, i)),          # src ids
                pl.BlockSpec((1, tile_e), lambda i: (0, i)),          # dst ids
                pl.BlockSpec((n_classes, 2 * N), lambda i: (0, 0)),   # P^T (resident)
                pl.BlockSpec((n_classes, 1), lambda i: (0, 0)),       # bias
            ],
            out_specs=pl.BlockSpec((n_classes, tile_e), lambda i: (0, i)),
        ),
        compiler_params=pltpu.CompilerParams(
            dimension_semantics=("parallel",)),
        cost_estimate=cost,
    )(src_p, dst_p, p_t, b2d)

    # transpose back to the PyTorch (E, n_classes) layout, drop the padding
    return out_t[:, :E].T


if __name__ == "__main__":
    # Small, deterministic synthetic "graph".
    in_dims = 32
    n_classes = 8
    N = 64            # nodes
    E = 1000          # edges (not a multiple of tile_e: exercises the pad path)

    key = jax.random.PRNGKey(0)
    k_h, k_src, k_dst, k_w, k_b = jax.random.split(key, 5)

    h = jax.random.normal(k_h, (N, in_dims), dtype=jnp.float32)
    src_idx = jax.random.randint(k_src, (E,), 0, N, dtype=jnp.int32)
    dst_idx = jax.random.randint(k_dst, (E,), 0, N, dtype=jnp.int32)

    # nn.Linear(2*in_dims, n_classes) default init: U(-1/sqrt(fan_in), +...)
    fan_in = 2 * in_dims
    bound = 1.0 / (fan_in ** 0.5)
    W = jax.random.uniform(k_w, (n_classes, fan_in), jnp.float32, -bound, bound)
    b = jax.random.uniform(k_b, (n_classes,), jnp.float32, -bound, bound)

    score = hetero_mlp_predictor(h, src_idx, dst_idx, W, b, tile_e=512)
    score = jax.block_until_ready(score)
    assert score.shape == (E, n_classes)
    assert score.dtype == jnp.float32

    # Reference 1: same numerics as the kernel (bf16-rounded inputs, f32 math)
    # -> tight tolerance (only f32 accumulation-order differences remain).
    h_q = h.astype(jnp.bfloat16).astype(jnp.float32)
    W_q = W.astype(jnp.bfloat16).astype(jnp.float32)
    x_q = jnp.concatenate([jnp.take(h_q, src_idx, axis=0),
                           jnp.take(h_q, dst_idx, axis=0)], axis=1)
    ref_q = x_q @ W_q.T + b
    assert jnp.allclose(score, ref_q, atol=1e-4, rtol=1e-4), \
        "mismatch vs bf16-input reference"

    # Reference 2: the exact f32 PyTorch forward -> loose tolerance
    # (difference bounded by bf16 rounding of the inputs).
    x32 = jnp.concatenate([jnp.take(h, src_idx, axis=0),
                           jnp.take(h, dst_idx, axis=0)], axis=1)
    ref32 = x32 @ W.T + b
    assert jnp.allclose(score, ref32, atol=5e-2, rtol=5e-2), \
        "mismatch vs f32 reference"

    print("KERNEL_OK")
</pallas_src>

<mosaic_0001>
module attributes {stable_mosaic.version = 11 : i64} {
  func.func @_edge_score_kernel(%arg0: i32, %arg1: memref<1x512xi32, #tpu.memory_space<vmem>>, %arg2: memref<1x512xi32, #tpu.memory_space<vmem>>, %arg3: memref<8x128xf32, #tpu.memory_space<vmem>>, %arg4: memref<8x1xf32, #tpu.memory_space<vmem>>, %arg5: memref<8x512xf32, #tpu.memory_space<vmem>>) attributes {dimension_semantics = [#tpu.dimension_semantics<parallel>], iteration_bounds = array<i64: 2>, scalar_prefetch = 0 : i64, scratch_operands = 0 : i64, tpu.core_type = #tpu.core_type<tc>, window_params = [{transform_indices = @transform_0, window_bounds = array<i64: 1, 512>}, {transform_indices = @transform_1, window_bounds = array<i64: 1, 512>}, {pipeline_mode = #tpu.pipeline_mode<synchronous>, transform_indices = @transform_2, window_bounds = array<i64: 8, 128>}, {pipeline_mode = #tpu.pipeline_mode<synchronous>, transform_indices = @transform_3, window_bounds = array<i64: 8, 1>}, {transform_indices = @transform_4, window_bounds = array<i64: 8, 512>}]} {
    %0 = tpu.iota {dimensions = array<i32: 0>} : vector<128x512xi32>
    %c0 = arith.constant 0 : index
    %c0_0 = arith.constant 0 : index
    %1 = vector.load %arg1[%c0, %c0_0] : memref<1x512xi32, #tpu.memory_space<vmem>>, vector<1x512xi32>
    %2 = vector.broadcast %1 : vector<1x512xi32> to vector<128x512xi32>
    %3 = arith.cmpi eq, %0, %2 : vector<128x512xi32>
    %c0_1 = arith.constant 0 : index
    %c0_2 = arith.constant 0 : index
    %4 = vector.load %arg2[%c0_1, %c0_2] : memref<1x512xi32, #tpu.memory_space<vmem>>, vector<1x512xi32>
    %c64_i32 = arith.constant 64 : i32
    %5 = vector.broadcast %c64_i32 : i32 to vector<1x512xi32>
    %6 = arith.addi %4, %5 : vector<1x512xi32>
    %7 = vector.broadcast %6 : vector<1x512xi32> to vector<128x512xi32>
    %8 = arith.cmpi eq, %0, %7 : vector<128x512xi32>
    %9 = arith.ori %3, %8 : vector<128x512xi1>
    %cst = arith.constant 1.000000e+00 : f32
    %cst_3 = arith.constant 0.000000e+00 : f32
    %10 = vector.broadcast %cst : f32 to vector<128x512xf32>
    %11 = vector.broadcast %cst_3 : f32 to vector<128x512xf32>
    %12 = arith.select %9, %10, %11 : vector<128x512xi1>, vector<128x512xf32>
    %c0_4 = arith.constant 0 : index
    %c0_5 = arith.constant 0 : index
    %13 = vector.load %arg3[%c0_4, %c0_5] : memref<8x128xf32, #tpu.memory_space<vmem>>, vector<8x128xf32>
    %cst_6 = arith.constant dense<0.000000e+00> : vector<8x512xf32>
    %14 = tpu.matmul %13, %12, %cst_6 {dimension_numbers = #tpu.dot_dimension_numbers<[1], [0], [0], [1], [0, 0, 1, 1], [], []>} : vector<8x128xf32>, vector<128x512xf32>, vector<8x512xf32> -> vector<8x512xf32>
    %c0_7 = arith.constant 0 : index
    %c0_8 = arith.constant 0 : index
    %15 = vector.load %arg4[%c0_7, %c0_8] : memref<8x1xf32, #tpu.memory_space<vmem>>, vector<8x1xf32>
    %16 = vector.broadcast %15 : vector<8x1xf32> to vector<8x512xf32>
    %17 = arith.addf %14, %16 : vector<8x512xf32>
    %c0_9 = arith.constant 0 : index
    %c0_10 = arith.constant 0 : index
    %18 = vector.load %arg5[%c0_9, %c0_10] : memref<8x512xf32, #tpu.memory_space<vmem>>, vector<8x512xf32>
    tpu.vector_store %arg5[%c0_9, %c0_10], %17 {strides = array<i32>} : memref<8x512xf32, #tpu.memory_space<vmem>>, vector<8x512xf32>,
    return
  }
  func.func @transform_0(%arg0: i32) -> (i32, i32) {
    %c0_i32 = arith.constant 0 : i32
    %c0_i32_0 = arith.constant 0 : i32
    return %c0_i32, %arg0 : i32, i32
  }
  func.func @transform_1(%arg0: i32) -> (i32, i32) {
    %c0_i32 = arith.constant 0 : i32
    %c0_i32_0 = arith.constant 0 : i32
    return %c0_i32, %arg0 : i32, i32
  }
  func.func @transform_2(%arg0: i32) -> (i32, i32) {
    %c0_i32 = arith.constant 0 : i32
    %c0_i32_0 = arith.constant 0 : i32
    %c0_i32_1 = arith.constant 0 : i32
    return %c0_i32, %c0_i32_0 : i32, i32
  }
  func.func @transform_3(%arg0: i32) -> (i32, i32) {
    %c0_i32 = arith.constant 0 : i32
    %c0_i32_0 = arith.constant 0 : i32
    %c0_i32_1 = arith.constant 0 : i32
    return %c0_i32, %c0_i32_0 : i32, i32
  }
  func.func @transform_4(%arg0: i32) -> (i32, i32) {
    %c0_i32 = arith.constant 0 : i32
    %c0_i32_0 = arith.constant 0 : i32
    return %c0_i32, %arg0 : i32, i32
  }
}

</mosaic_0001>

<bundles_post_ra>
// kernel: tpu_custom_call.1
= control target key start
LH: loop header
LB: loop body
LE: loop exit
PB: predicated region body
PF: predicated region fallthrough
CT: control target
= control target key end

     0   :  { %9 = vsyncpa [#allocation3], 0  ;;  %s1557_s0 = inlined_call_operand.vmem [shape: s32[1,1024], index: 0, kind: input, shape index: {}]   ;;  %s1558_s1 = inlined_call_operand.hbm [shape: s32[1,1024], index: 1, kind: input, shape index: {}]   ;;  %s1559_s2 = inlined_call_operand.hbm [shape: f32[8,128], index: 2, kind: input, shape index: {}]   ;;  %s1560_s3 = inlined_call_operand.vmem [shape: f32[8,1], index: 3, kind: input, shape index: {}]   ;;  %s1561_s4 = inlined_call_operand.hbm [shape: f32[8,1024], index: 4, kind: output, shape index: {}]  }
   0x1   :  { %11 = vsyncpa [#allocation3 + $0x1], 0 }
   0x2   :  { %12 = vsyncpa [#allocation6], 0 }
   0x3   :  { %13 = vsyncpa [#allocation4], 0 }
   0x4   :  { %15 = vsyncpa [#allocation4 + $0x1], 0  ;;  %s1033_s15 = smov 0   ;;  %s1035_s16 = smov 0  }
   0x5   :  { %s1037_s17 = smov 0   ;;  %s1039_s18 = smov 0  }
   0x6 LB: > { %s1054_s19 = sadd.s32 4294967295, %s1003_s18   ;;  %s732_s20 = sadd.s32 4294967294, %s1003_s18   ;;  %s1003_s18 = sphi %s1039_s18, %s1571_s18   ;;  %s999_s17 = sphi %s1037_s17, %s1570_s17   ;;  %s995_s16 = sphi %s1035_s16, %s1569_s16   ;;  %s991_s15 = sphi %s1033_s15, %s1568_s15  }
   0x7   : > { %p67_p0 = scmp.ne.s32.totalorder %s995_s16, %s991_s15  ;;  %p68_p1 = scmp.eq.s32.totalorder %s1054_s19, 0 }
   0x8   : > { %p133_p2 = scmp.eq.s32.totalorder %s1054_s19, 1  ;;  %p139_p3 = scmp.eq.s32.totalorder %s732_s20, 1 }
   0x9   : > { %p1063_p4 = por %p68_p1, %p67_p0  ;;  %p733_p5 = scmp.ge.s32.totalorder %s1003_s18, 1 }
   0xa   : > { %p1068_p6 = por %p139_p3, %p67_p0  ;;  %p146_p7 = scmp.lt.s32.totalorder %s1003_s18, 3 }
   0xb   : > { %s158_s25 = sshll.u32 %s1559_s2, 4  ;;  %s1005_s27 = smov [#allocation5]   ;;  %s159_s25 = int_to_ptr.hbm [resolvable:$true] %s158_s25 }
   0xc   : > { %p1076_p8 = pnand %p733_p5, %p146_p7  ;;  %s160_s28 = sshll.u32 %s1005_s27, 4  ;;  %s161_s28 = int_to_ptr.vmem [resolvable:$true] %s160_s28 }
   0xd   : > { %s1086_s29 = sadd.s32 1, %s1003_s18   ;;  %s54_s30 = sadd.s32 1, %s999_s17 }
   0xe   : > { %p821_p10 = pneg %p1076_p8  ;;  %s51_s5 = ssub.s32 %s1003_s18, %s1086_s29 }
   0xf   : > { %p52_p12 = scmp.eq.s32.totalorder %s51_s5, 0  ;;  %p61_p13 = scmp.ne.s32.totalorder %s999_s17, %s995_s16 }
  0x10   : > { %p822_p11 = pnand %p821_p10, %p68_p1  ;;  %p62_p0 = scmp.eq.s32.totalorder %s1003_s18, 0 }
  0x11   : > { %s1095_s6 = scalar_select %p52_p12, %s999_s17, %s54_s30  }
  0x12   : > { %824 = dma.hbm_to_vmem [thread:$0]  (!%p822_p11), %s159_s25, 128, %s161_s28, [#allocation6]  }
  0x13   : > { %p1099_p3 = por %p133_p2, %p61_p13  ;;  %p834_p5 = scmp.lt.s32.totalorder %s1003_s18, 2 }
  0x14   : > { %s182_s8 = sand.u32 1, %s999_s17   ;;  %s737_s9 = sshll.u32 %s1003_s18, 2 }
  0x15   : > { %p63_p7 = por %p62_p0, %p61_p13  ;;  %s736_s10 = sshll.u32 %s182_s8, 2 }
  0x16   : > { %s190_s13 = scalar_lea.hbm %s1558_s1, %s737_s9  ;;  %s186_s20 = scalar_lea.vmem [#allocation2], %s736_s10 }
  0x17   : > { %s192_s14 = sshll.u32 %s190_s13, 4  ;;  %s194_s23 = sshll.u32 %s186_s20, 4  ;;  %s193_s14 = int_to_ptr.hbm [resolvable:$true] %s192_s14  ;;  %s195_s23 = int_to_ptr.vmem [resolvable:$true] %s194_s23 }
  0x18   : > { %p1109_p10 = pnand %p834_p5, %p63_p7  ;;  %s183_s25 = scalar_lea.sflag [#allocation3], %s182_s8 }
  0x19   : > { %s903_s27 = sshra.s32 %s193_s14, 4  ;;  %s910_s9 = scalar_lea.hbm %s1558_s1, 8  ;;  %s904_s27 = int_to_ptr.hbm [resolvable:$true] %s903_s27 }
  0x1a   : > { %s905_s28 = scalar_lea.hbm %s904_s27, 4  ;;  %p907_p11 = pneg %p1109_p10 }
  0x1b   : > { %p906_p2 = scmp.ne.s32.totalorder %s904_s27, %s905_s28  ;;  %p911_p0 = scmp.lt.s32.totalorder %s904_s27, %s1558_s1 }
  0x1c   : > { %p912_p5 = scmp.lt.s32.totalorder %s910_s9, %s905_s28 }
  0x1d   : > { %p908_p12 = pnand %p907_p11, %p906_p2 }
  0x1e   : > { %p913_p7 = por %p912_p5, %p911_p0 }
  0x1f   : > { %p909_p13 = pneg %p908_p12 }
  0x21   : > { %p914_p9 = pnand %p913_p7, %p909_p13 }
  0x23   : > { %917 = shalt.err (!%p914_p9)
}
  0x24   : > { %828 = dma.hbm_to_vmem [thread:$0]  (!%p1109_p10), %s193_s14, 64, %s195_s23, %s183_s25  }
  0x25   : > { %203 = sbr.rel (%p1076_p8) target bundleno = 252 (0xfc), region = 36  ;;  %s1126_s8 = sand.u32 (!%p1076_p8), 1, %s995_s16  }
  0x26   : > { %s739_s12 = sshll.u32 (!%p1076_p8), %s1126_s8, 2  ;;  %s206_s13 = scalar_lea.sflag (!%p1076_p8), [#allocation3], %s1126_s8 }
  0x27   : > { %s209_s20 = scalar_lea.vmem (!%p1076_p8), [#allocation2], %s739_s12 }
  0x2a   : > { %978 = dma.done.wait (%p1063_p4), %s206_s13, 64  }
  0x2b   : > { %980 = vsyncadd (%p1063_p4), %s206_s13, 4294967232 }
  0x2c   : > { %982 = dma.done.wait (%p68_p1), [#allocation6], 128  }
  0x2d   : > { %984 = vsyncadd (%p68_p1), [#allocation6], 4294967168  ;;  %s742_s26 = sshll.u32 %s1054_s19, 2  ;;  %v251_v0 = vlaneseq  ;;  %v337_v4 = vld [vmem:[%s209_s20] sm:$0xf]  ;;  %v1006_v15 = vmov 1.0  }
  0x2e   : > { %p245_p8 = scmp.lt.s32.totalorder %s742_s26, 7  ;;  %v338_v6 = vadd.s32 64, %v337_v4  ;;  %v536_v26 = vld [vmem:[%s1560_s3] sm:$0xff]  ;;  %v1007_v27 = vmov 0   ;;  %v535_v31 = vld [vmem:[#allocation5] sm:$0xff]  ;;  %s741_s27 = sshll.u32 %s1126_s8, 5 }
  0x2f   : > { %v1139_v1 = vshrl.u32 %v251_v0, 7  ;;  %872 = vset.pattern.permute.xlu0 %v1007_v27  ;;  %s812_s28 = sshll.u32 %s1054_s19, 5  ;;  %s243_s10 = scalar_lea.vmem [#allocation7], %s741_s27 }
  0x30   : > { %s1573_s26 = smov (!%p245_p8, %s742_s26), 7  ;;  %v1151_v9 = vperm.slane %v338_v6, 2  ;;  %v1153_v10 = vperm.slane %v338_v6, 3  ;;  %v1167_v13 = vperm.slane %v338_v6, 0  ;;  %v1176_v16 = vperm.slane %v338_v6, 1  ;;  %539 = vperm.xlu0 %872, %v536_v26   ;;  %s638_s9 = scalar_lea.hbm %s1561_s4, %s812_s28 }
  0x31   : > { %s247_s24 = scalar_lea.vmem %s1557_s0, %s1573_s26  ;;  %v267_v2 = vadd.s32 120, %v1139_v1  ;;  %v266_v8 = vadd.s32 112, %v1139_v1  ;;  %v1156_v11 = vadd.s32 104, %v1139_v1  ;;  %v1179_v17 = vadd.s32 96, %v1139_v1  ;;  %s640_s11 = sshll.u32 %s243_s10, 4  ;;  %s641_s11 = int_to_ptr.vmem [resolvable:$true] %s640_s11 }
  0x32   : > { %v268_v3 = vld [vmem:[%s247_s24] sm:$0xf]  ;;  %v1204_v18 = vadd.s32 88, %v1139_v1  ;;  %v1223_v19 = vadd.s32 80, %v1139_v1  ;;  %v1246_v20 = vadd.s32 72, %v1139_v1  ;;  %v1269_v21 = vadd.s32 64, %v1139_v1 }
  0x33   : > { %v1145_v5 = vperm.slane %v268_v3, 2  ;;  %v1147_v7 = vperm.slane %v268_v3, 3  ;;  %v1159_v12 = vperm.slane %v268_v3, 0  ;;  %vm405_vm2 = vcmp.eq.s32.totalorder %v267_v2, %v1151_v9  ;;  %s642_s12 = sshll.u32 %s638_s9, 4  ;;  %s627_s19 = scalar_lea.sflag [#allocation4], %s1126_s8  ;;  %s643_s12 = int_to_ptr.hbm [resolvable:$true] %s642_s12 }
  0x34   : > { %vm406_vm3 = vcmp.eq.s32.totalorder %v267_v2, %v1153_v10  ;;  %vm401_vm5 = vcmp.eq.s32.totalorder %v266_v8, %v1151_v9  ;;  %vm402_vm8 = vcmp.eq.s32.totalorder %v266_v8, %v1153_v10  ;;  %v1169_v14 = vperm.slane %v268_v3, 1  ;;  %s947_s13 = sshra.s32 %s643_s12, 4  ;;  %s953_s23 = scalar_lea.hbm %s1561_s4, 64  ;;  %s948_s13 = int_to_ptr.hbm [resolvable:$true] %s947_s13 }
  0x35   : > { %vm335_vm0 = vcmp.eq.s32.totalorder %v267_v2, %v1145_v5  ;;  %vm336_vm1 = vcmp.eq.s32.totalorder %v267_v2, %v1147_v7  ;;  %vm331_vm4 = vcmp.eq.s32.totalorder %v266_v8, %v1145_v5  ;;  %vm332_vm7 = vcmp.eq.s32.totalorder %v266_v8, %v1147_v7  ;;  %s949_s20 = scalar_lea.hbm %s948_s13, 32  ;;  %p954_p10 = scmp.lt.s32.totalorder %s948_s13, %s1561_s4 }
  0x36   : > { %vm469_vm6 = vmor %vm335_vm0, %vm405_vm2  ;;  %vm327_vm10 = vcmp.eq.s32.totalorder %v1156_v11, %v1145_v5  ;;  %vm397_vm11 = vcmp.eq.s32.totalorder %v1156_v11, %v1151_v9  ;;  %vm328_vm13 = vcmp.eq.s32.totalorder %v1156_v11, %v1147_v7  ;;  %vm398_vm14 = vcmp.eq.s32.totalorder %v1156_v11, %v1153_v10  ;;  %p950_p1 = scmp.ne.s32.totalorder %s948_s13, %s949_s20  ;;  %p955_p2 = scmp.lt.s32.totalorder %s953_s23, %s949_s20 }
  0x37   : > { %775 = vmatpush.msk.msra.mxu2 %vm469_vm6, %v1006_v15  ;;  %vm470_vm9 = vmor %vm336_vm1, %vm406_vm3  ;;  %vm333_vm0 = vcmp.eq.s32.totalorder %v267_v2, %v1159_v12  ;;  %vm403_vm1 = vcmp.eq.s32.totalorder %v267_v2, %v1167_v13  ;;  %vm334_vm3 = vcmp.eq.s32.totalorder %v267_v2, %v1169_v14  ;;  %vm323_vm6 = vcmp.eq.s32.totalorder %v1179_v17, %v1145_v5 }
  0x38   : > { %791 = vmatpush.msk.msra.mxu3 %vm470_vm9, %v1006_v15  ;;  %vm465_vm12 = vmor %vm331_vm4, %vm401_vm5  ;;  %vm404_vm4 = vcmp.eq.s32.totalorder %v267_v2, %v1176_v16  ;;  %vm324_vm9 = vcmp.eq.s32.totalorder %v1179_v17, %v1147_v7  ;;  %v1292_v22 = vadd.s32 56, %v1139_v1  ;;  %v1315_v23 = vadd.s32 48, %v1139_v1  ;;  %p951_p4 = pnand %p950_p1, %p1099_p3  ;;  %p956_p11 = por %p955_p2, %p954_p10 }
  0x39   : > { %776 = vmatpush.msk.msra.mxu2 %vm465_vm12, %v1006_v15  ;;  %vm466_vm15 = vmor %vm332_vm7, %vm402_vm8  ;;  %vm393_vm7 = vcmp.eq.s32.totalorder %v1179_v17, %v1151_v9  ;;  %vm329_vm12 = vcmp.eq.s32.totalorder %v266_v8, %v1159_v12  ;;  %v1338_v24 = vadd.s32 40, %v1139_v1  ;;  %v1361_v25 = vadd.s32 32, %v1139_v1 }
  0x3a   : > { %792 = vmatpush.msk.msra.mxu3 %vm466_vm15, %v1006_v15  ;;  %vm461_vm2 = vmor %vm327_vm10, %vm397_vm11  ;;  %vm394_vm10 = vcmp.eq.s32.totalorder %v1179_v17, %v1153_v10  ;;  %vm330_vm15 = vcmp.eq.s32.totalorder %v266_v8, %v1169_v14  ;;  %v1396_v28 = vadd.s32 24, %v1139_v1  ;;  %v1419_v29 = vadd.s32 16, %v1139_v1  ;;  %p952_p9 = pneg %p951_p4 }
  0x3b   : > { %777 = vmatpush.msk.msra.mxu2 %vm461_vm2, %v1006_v15  ;;  %vm462_vm5 = vmor %vm328_vm13, %vm398_vm14  ;;  %vm399_vm13 = vcmp.eq.s32.totalorder %v266_v8, %v1167_v13  ;;  %vm319_vm2 = vcmp.eq.s32.totalorder %v1204_v18, %v1145_v5  ;;  %v1442_v30 = vadd.s32 8, %v1139_v1 }
  0x3c   : > { %793 = vmatpush.msk.msra.mxu3 %vm462_vm5, %v1006_v15  ;;  %vm467_vm8 = vmor %vm333_vm0, %vm403_vm1  ;;  %vm400_vm0 = vcmp.eq.s32.totalorder %v266_v8, %v1176_v16  ;;  %vm320_vm5 = vcmp.eq.s32.totalorder %v1204_v18, %v1147_v7  ;;  %p957_p12 = pnand %p956_p11, %p952_p9 }
  0x3d   : > { %743 = vmatpush.msk.msra.mxu0 %vm467_vm8, %v1006_v15  ;;  %vm468_vm11 = vmor %vm334_vm3, %vm404_vm4  ;;  %vm389_vm3 = vcmp.eq.s32.totalorder %v1204_v18, %v1151_v9  ;;  %vm325_vm8 = vcmp.eq.s32.totalorder %v1156_v11, %v1159_v12 }
  0x3e   : > { %759 = vmatpush.msk.msra.mxu1 %vm468_vm11, %v1006_v15  ;;  %vm457_vm14 = vmor %vm323_vm6, %vm393_vm7  ;;  %vm390_vm6 = vcmp.eq.s32.totalorder %v1204_v18, %v1153_v10  ;;  %vm326_vm11 = vcmp.eq.s32.totalorder %v1156_v11, %v1169_v14 }
  0x3f   : > { %778 = vmatpush.msk.msra.mxu2 %vm457_vm14, %v1006_v15  ;;  %vm458_vm1 = vmor %vm324_vm9, %vm394_vm10  ;;  %vm395_vm9 = vcmp.eq.s32.totalorder %v1156_v11, %v1167_v13  ;;  %vm315_vm14 = vcmp.eq.s32.totalorder %v1223_v19, %v1145_v5 }
  0x40   : > { %794 = vmatpush.msk.msra.mxu3 %vm458_vm1, %v1006_v15  ;;  %vm463_vm4 = vmor %vm329_vm12, %vm399_vm13  ;;  %vm396_vm12 = vcmp.eq.s32.totalorder %v1156_v11, %v1176_v16  ;;  %vm316_vm1 = vcmp.eq.s32.totalorder %v1223_v19, %v1147_v7 }
  0x41   : > { %744 = vmatpush.msk.msra.mxu0 %vm463_vm4, %v1006_v15  ;;  %vm464_vm7 = vmor %vm330_vm15, %vm400_vm0  ;;  %vm385_vm15 = vcmp.eq.s32.totalorder %v1223_v19, %v1151_v9  ;;  %vm321_vm4 = vcmp.eq.s32.totalorder %v1179_v17, %v1159_v12 }
  0x42   : > { %760 = vmatpush.msk.msra.mxu1 %vm464_vm7, %v1006_v15  ;;  %vm453_vm10 = vmor %vm319_vm2, %vm389_vm3  ;;  %vm386_vm2 = vcmp.eq.s32.totalorder %v1223_v19, %v1153_v10  ;;  %vm322_vm7 = vcmp.eq.s32.totalorder %v1179_v17, %v1169_v14 }
  0x43   : > { %779 = vmatpush.msk.msra.mxu2 %vm453_vm10, %v1006_v15  ;;  %vm454_vm13 = vmor %vm320_vm5, %vm390_vm6  ;;  %vm391_vm5 = vcmp.eq.s32.totalorder %v1179_v17, %v1167_v13  ;;  %vm311_vm10 = vcmp.eq.s32.totalorder %v1246_v20, %v1145_v5 }
  0x44   : > { %795 = vmatpush.msk.msra.mxu3 %vm454_vm13, %v1006_v15  ;;  %vm459_vm0 = vmor %vm325_vm8, %vm395_vm9  ;;  %vm392_vm8 = vcmp.eq.s32.totalorder %v1179_v17, %v1176_v16  ;;  %vm312_vm13 = vcmp.eq.s32.totalorder %v1246_v20, %v1147_v7 }
  0x45   : > { %745 = vmatpush.msk.msra.mxu0 %vm459_vm0, %v1006_v15  ;;  %vm460_vm3 = vmor %vm326_vm11, %vm396_vm12  ;;  %vm381_vm11 = vcmp.eq.s32.totalorder %v1246_v20, %v1151_v9  ;;  %vm317_vm0 = vcmp.eq.s32.totalorder %v1204_v18, %v1159_v12 }
  0x46   : > { %761 = vmatpush.msk.msra.mxu1 %vm460_vm3, %v1006_v15  ;;  %vm449_vm6 = vmor %vm315_vm14, %vm385_vm15  ;;  %vm382_vm14 = vcmp.eq.s32.totalorder %v1246_v20, %v1153_v10  ;;  %vm318_vm3 = vcmp.eq.s32.totalorder %v1204_v18, %v1169_v14 }
  0x47   : > { %780 = vmatpush.msk.msra.mxu2 %vm449_vm6, %v1006_v15  ;;  %vm450_vm9 = vmor %vm316_vm1, %vm386_vm2  ;;  %vm387_vm1 = vcmp.eq.s32.totalorder %v1204_v18, %v1167_v13  ;;  %vm307_vm6 = vcmp.eq.s32.totalorder %v1269_v21, %v1145_v5 }
  0x48   : > { %796 = vmatpush.msk.msra.mxu3 %vm450_vm9, %v1006_v15  ;;  %vm455_vm12 = vmor %vm321_vm4, %vm391_vm5  ;;  %vm388_vm4 = vcmp.eq.s32.totalorder %v1204_v18, %v1176_v16  ;;  %vm308_vm9 = vcmp.eq.s32.totalorder %v1269_v21, %v1147_v7 }
  0x49   : > { %746 = vmatpush.msk.msra.mxu0 %vm455_vm12, %v1006_v15  ;;  %vm456_vm15 = vmor %vm322_vm7, %vm392_vm8  ;;  %vm377_vm7 = vcmp.eq.s32.totalorder %v1269_v21, %v1151_v9  ;;  %vm313_vm12 = vcmp.eq.s32.totalorder %v1223_v19, %v1159_v12 }
  0x4a   : > { %762 = vmatpush.msk.msra.mxu1 %vm456_vm15, %v1006_v15  ;;  %vm445_vm2 = vmor %vm311_vm10, %vm381_vm11  ;;  %vm378_vm10 = vcmp.eq.s32.totalorder %v1269_v21, %v1153_v10  ;;  %vm314_vm15 = vcmp.eq.s32.totalorder %v1223_v19, %v1169_v14 }
  0x4b   : > { %781 = vmatpush.msk.msra.mxu2 %vm445_vm2, %v1006_v15  ;;  %vm446_vm5 = vmor %vm312_vm13, %vm382_vm14  ;;  %vm383_vm13 = vcmp.eq.s32.totalorder %v1223_v19, %v1167_v13  ;;  %vm303_vm2 = vcmp.eq.s32.totalorder %v1292_v22, %v1145_v5 }
  0x4c   : > { %797 = vmatpush.msk.msra.mxu3 %vm446_vm5, %v1006_v15  ;;  %vm451_vm8 = vmor %vm317_vm0, %vm387_vm1  ;;  %vm384_vm0 = vcmp.eq.s32.totalorder %v1223_v19, %v1176_v16  ;;  %vm304_vm5 = vcmp.eq.s32.totalorder %v1292_v22, %v1147_v7 }
  0x4d   : > { %747 = vmatpush.msk.msra.mxu0 %vm451_vm8, %v1006_v15  ;;  %vm452_vm11 = vmor %vm318_vm3, %vm388_vm4  ;;  %vm373_vm3 = vcmp.eq.s32.totalorder %v1292_v22, %v1151_v9  ;;  %vm309_vm8 = vcmp.eq.s32.totalorder %v1246_v20, %v1159_v12 }
  0x4e   : > { %763 = vmatpush.msk.msra.mxu1 %vm452_vm11, %v1006_v15  ;;  %vm441_vm14 = vmor %vm307_vm6, %vm377_vm7  ;;  %vm374_vm6 = vcmp.eq.s32.totalorder %v1292_v22, %v1153_v10  ;;  %vm310_vm11 = vcmp.eq.s32.totalorder %v1246_v20, %v1169_v14 }
  0x4f   : > { %782 = vmatpush.msk.msra.mxu2 %vm441_vm14, %v1006_v15  ;;  %vm442_vm1 = vmor %vm308_vm9, %vm378_vm10  ;;  %vm379_vm9 = vcmp.eq.s32.totalorder %v1246_v20, %v1167_v13  ;;  %vm299_vm14 = vcmp.eq.s32.totalorder %v1315_v23, %v1145_v5 }
  0x50   : > { %798 = vmatpush.msk.msra.mxu3 %vm442_vm1, %v1006_v15  ;;  %vm447_vm4 = vmor %vm313_vm12, %vm383_vm13  ;;  %vm380_vm12 = vcmp.eq.s32.totalorder %v1246_v20, %v1176_v16  ;;  %vm300_vm1 = vcmp.eq.s32.totalorder %v1315_v23, %v1147_v7 }
  0x51   : > { %748 = vmatpush.msk.msra.mxu0 %vm447_vm4, %v1006_v15  ;;  %vm448_vm7 = vmor %vm314_vm15, %vm384_vm0  ;;  %vm369_vm15 = vcmp.eq.s32.totalorder %v1315_v23, %v1151_v9  ;;  %vm305_vm4 = vcmp.eq.s32.totalorder %v1269_v21, %v1159_v12 }
  0x52   : > { %764 = vmatpush.msk.msra.mxu1 %vm448_vm7, %v1006_v15  ;;  %vm437_vm10 = vmor %vm303_vm2, %vm373_vm3  ;;  %vm370_vm2 = vcmp.eq.s32.totalorder %v1315_v23, %v1153_v10  ;;  %vm306_vm7 = vcmp.eq.s32.totalorder %v1269_v21, %v1169_v14 }
  0x53   : > { %783 = vmatpush.msk.msra.mxu2 %vm437_vm10, %v1006_v15  ;;  %vm438_vm13 = vmor %vm304_vm5, %vm374_vm6  ;;  %vm375_vm5 = vcmp.eq.s32.totalorder %v1269_v21, %v1167_v13  ;;  %vm295_vm10 = vcmp.eq.s32.totalorder %v1338_v24, %v1145_v5 }
  0x54   : > { %799 = vmatpush.msk.msra.mxu3 %vm438_vm13, %v1006_v15  ;;  %vm443_vm0 = vmor %vm309_vm8, %vm379_vm9  ;;  %vm376_vm8 = vcmp.eq.s32.totalorder %v1269_v21, %v1176_v16  ;;  %vm296_vm13 = vcmp.eq.s32.totalorder %v1338_v24, %v1147_v7 }
  0x55   : > { %749 = vmatpush.msk.msra.mxu0 %vm443_vm0, %v1006_v15  ;;  %vm444_vm3 = vmor %vm310_vm11, %vm380_vm12  ;;  %vm365_vm11 = vcmp.eq.s32.totalorder %v1338_v24, %v1151_v9  ;;  %vm301_vm0 = vcmp.eq.s32.totalorder %v1292_v22, %v1159_v12 }
  0x56   : > { %765 = vmatpush.msk.msra.mxu1 %vm444_vm3, %v1006_v15  ;;  %vm433_vm6 = vmor %vm299_vm14, %vm369_vm15  ;;  %vm366_vm14 = vcmp.eq.s32.totalorder %v1338_v24, %v1153_v10  ;;  %vm302_vm3 = vcmp.eq.s32.totalorder %v1292_v22, %v1169_v14 }
  0x57   : > { %784 = vmatpush.msk.msra.mxu2 %vm433_vm6, %v1006_v15  ;;  %vm434_vm9 = vmor %vm300_vm1, %vm370_vm2  ;;  %vm371_vm1 = vcmp.eq.s32.totalorder %v1292_v22, %v1167_v13  ;;  %vm291_vm6 = vcmp.eq.s32.totalorder %v1361_v25, %v1145_v5 }
  0x58   : > { %800 = vmatpush.msk.msra.mxu3 %vm434_vm9, %v1006_v15  ;;  %vm439_vm12 = vmor %vm305_vm4, %vm375_vm5  ;;  %vm372_vm4 = vcmp.eq.s32.totalorder %v1292_v22, %v1176_v16  ;;  %vm292_vm9 = vcmp.eq.s32.totalorder %v1361_v25, %v1147_v7 }
  0x59   : > { %750 = vmatpush.msk.msra.mxu0 %vm439_vm12, %v1006_v15  ;;  %vm440_vm15 = vmor %vm306_vm7, %vm376_vm8  ;;  %vm361_vm7 = vcmp.eq.s32.totalorder %v1361_v25, %v1151_v9  ;;  %vm297_vm12 = vcmp.eq.s32.totalorder %v1315_v23, %v1159_v12 }
  0x5a   : > { %766 = vmatpush.msk.msra.mxu1 %vm440_vm15, %v1006_v15  ;;  %vm429_vm2 = vmor %vm295_vm10, %vm365_vm11  ;;  %vm362_vm10 = vcmp.eq.s32.totalorder %v1361_v25, %v1153_v10  ;;  %vm298_vm15 = vcmp.eq.s32.totalorder %v1315_v23, %v1169_v14 }
  0x5b   : > { %785 = vmatpush.msk.msra.mxu2 %vm429_vm2, %v1006_v15  ;;  %vm430_vm5 = vmor %vm296_vm13, %vm366_vm14  ;;  %vm367_vm13 = vcmp.eq.s32.totalorder %v1315_v23, %v1167_v13  ;;  %vm287_vm2 = vcmp.eq.s32.totalorder %v1396_v28, %v1145_v5 }
  0x5c   : > { %801 = vmatpush.msk.msra.mxu3 %vm430_vm5, %v1006_v15  ;;  %vm435_vm8 = vmor %vm301_vm0, %vm371_vm1  ;;  %vm368_vm0 = vcmp.eq.s32.totalorder %v1315_v23, %v1176_v16  ;;  %vm288_vm5 = vcmp.eq.s32.totalorder %v1396_v28, %v1147_v7 }
  0x5d   : > { %751 = vmatpush.msk.msra.mxu0 %vm435_vm8, %v1006_v15  ;;  %vm436_vm11 = vmor %vm302_vm3, %vm372_vm4  ;;  %vm357_vm3 = vcmp.eq.s32.totalorder %v1396_v28, %v1151_v9  ;;  %vm293_vm8 = vcmp.eq.s32.totalorder %v1338_v24, %v1159_v12 }
  0x5e   : > { %767 = vmatpush.msk.msra.mxu1 %vm436_vm11, %v1006_v15  ;;  %vm425_vm14 = vmor %vm291_vm6, %vm361_vm7  ;;  %vm358_vm6 = vcmp.eq.s32.totalorder %v1396_v28, %v1153_v10  ;;  %vm294_vm11 = vcmp.eq.s32.totalorder %v1338_v24, %v1169_v14 }
  0x5f   : > { %786 = vmatpush.msk.msra.mxu2 %vm425_vm14, %v1006_v15  ;;  %vm426_vm1 = vmor %vm292_vm9, %vm362_vm10  ;;  %vm363_vm9 = vcmp.eq.s32.totalorder %v1338_v24, %v1167_v13  ;;  %vm283_vm14 = vcmp.eq.s32.totalorder %v1419_v29, %v1145_v5 }
  0x60   : > { %802 = vmatpush.msk.msra.mxu3 %vm426_vm1, %v1006_v15  ;;  %vm431_vm4 = vmor %vm297_vm12, %vm367_vm13  ;;  %vm364_vm12 = vcmp.eq.s32.totalorder %v1338_v24, %v1176_v16  ;;  %vm284_vm1 = vcmp.eq.s32.totalorder %v1419_v29, %v1147_v7 }
  0x61   : > { %752 = vmatpush.msk.msra.mxu0 %vm431_vm4, %v1006_v15  ;;  %vm432_vm7 = vmor %vm298_vm15, %vm368_vm0  ;;  %vm353_vm15 = vcmp.eq.s32.totalorder %v1419_v29, %v1151_v9  ;;  %vm289_vm4 = vcmp.eq.s32.totalorder %v1361_v25, %v1159_v12 }
  0x62   : > { %768 = vmatpush.msk.msra.mxu1 %vm432_vm7, %v1006_v15  ;;  %vm421_vm10 = vmor %vm287_vm2, %vm357_vm3  ;;  %vm354_vm2 = vcmp.eq.s32.totalorder %v1419_v29, %v1153_v10  ;;  %vm290_vm7 = vcmp.eq.s32.totalorder %v1361_v25, %v1169_v14 }
  0x63   : > { %787 = vmatpush.msk.msra.mxu2 %vm421_vm10, %v1006_v15  ;;  %vm422_vm13 = vmor %vm288_vm5, %vm358_vm6  ;;  %vm359_vm5 = vcmp.eq.s32.totalorder %v1361_v25, %v1167_v13  ;;  %vm279_vm10 = vcmp.eq.s32.totalorder %v1442_v30, %v1145_v5 }
  0x64   : > { %803 = vmatpush.msk.msra.mxu3 %vm422_vm13, %v1006_v15  ;;  %vm427_vm0 = vmor %vm293_vm8, %vm363_vm9  ;;  %vm360_vm8 = vcmp.eq.s32.totalorder %v1361_v25, %v1176_v16  ;;  %vm280_vm13 = vcmp.eq.s32.totalorder %v1442_v30, %v1147_v7 }
  0x65   : > { %753 = vmatpush.msk.msra.mxu0 %vm427_vm0, %v1006_v15  ;;  %vm428_vm3 = vmor %vm294_vm11, %vm364_vm12  ;;  %vm349_vm11 = vcmp.eq.s32.totalorder %v1442_v30, %v1151_v9  ;;  %vm285_vm0 = vcmp.eq.s32.totalorder %v1396_v28, %v1159_v12 }
  0x66   : > { %769 = vmatpush.msk.msra.mxu1 %vm428_vm3, %v1006_v15  ;;  %vm417_vm6 = vmor %vm283_vm14, %vm353_vm15  ;;  %vm350_vm14 = vcmp.eq.s32.totalorder %v1442_v30, %v1153_v10  ;;  %vm286_vm3 = vcmp.eq.s32.totalorder %v1396_v28, %v1169_v14 }
  0x67   : > { %788 = vmatpush.msk.msra.mxu2 %vm417_vm6, %v1006_v15  ;;  %vm418_vm9 = vmor %vm284_vm1, %vm354_vm2  ;;  %vm355_vm1 = vcmp.eq.s32.totalorder %v1396_v28, %v1167_v13  ;;  %vm275_vm6 = vcmp.eq.s32.totalorder %v1139_v1, %v1145_v5 }
  0x68   : > { %804 = vmatpush.msk.msra.mxu3 %vm418_vm9, %v1006_v15  ;;  %vm423_vm12 = vmor %vm289_vm4, %vm359_vm5  ;;  %vm356_vm4 = vcmp.eq.s32.totalorder %v1396_v28, %v1176_v16  ;;  %vm276_vm9 = vcmp.eq.s32.totalorder %v1139_v1, %v1147_v7 }
  0x69   : > { %754 = vmatpush.msk.msra.mxu0 %vm423_vm12, %v1006_v15  ;;  %vm424_vm15 = vmor %vm290_vm7, %vm360_vm8  ;;  %vm345_vm7 = vcmp.eq.s32.totalorder %v1139_v1, %v1151_v9  ;;  %vm281_vm12 = vcmp.eq.s32.totalorder %v1419_v29, %v1159_v12 }
  0x6a   : > { %770 = vmatpush.msk.msra.mxu1 %vm424_vm15, %v1006_v15  ;;  %vm413_vm2 = vmor %vm279_vm10, %vm349_vm11  ;;  %vm346_vm10 = vcmp.eq.s32.totalorder %v1139_v1, %v1153_v10  ;;  %vm282_vm15 = vcmp.eq.s32.totalorder %v1419_v29, %v1169_v14 }
  0x6b   : > { %789 = vmatpush.msk.msra.mxu2 %vm413_vm2, %v1006_v15  ;;  %vm414_vm5 = vmor %vm280_vm13, %vm350_vm14  ;;  %vm351_vm13 = vcmp.eq.s32.totalorder %v1419_v29, %v1167_v13  ;;  %vm277_vm2 = vcmp.eq.s32.totalorder %v1442_v30, %v1159_v12 }
  0x6c   : > { %805 = vmatpush.msk.msra.mxu3 %vm414_vm5, %v1006_v15  ;;  %vm419_vm8 = vmor %vm285_vm0, %vm355_vm1  ;;  %vm352_vm0 = vcmp.eq.s32.totalorder %v1419_v29, %v1176_v16  ;;  %vm278_vm5 = vcmp.eq.s32.totalorder %v1442_v30, %v1169_v14 }
  0x6d   : > { %755 = vmatpush.msk.msra.mxu0 %vm419_vm8, %v1006_v15  ;;  %vm420_vm11 = vmor %vm286_vm3, %vm356_vm4  ;;  %vm347_vm3 = vcmp.eq.s32.totalorder %v1442_v30, %v1167_v13  ;;  %vm273_vm8 = vcmp.eq.s32.totalorder %v1139_v1, %v1159_v12 }
  0x6e   : > { %771 = vmatpush.msk.msra.mxu1 %vm420_vm11, %v1006_v15  ;;  %vm409_vm14 = vmor %vm275_vm6, %vm345_vm7  ;;  %vm348_vm6 = vcmp.eq.s32.totalorder %v1442_v30, %v1176_v16  ;;  %vm274_vm11 = vcmp.eq.s32.totalorder %v1139_v1, %v1169_v14 }
  0x6f   : > { %790 = vmatpush.msk.msra.mxu2 %vm409_vm14, %v1006_v15  ;;  %vm410_vm1 = vmor %vm276_vm9, %vm346_vm10  ;;  %vm343_vm9 = vcmp.eq.s32.totalorder %v1139_v1, %v1167_v13 }
  0x70   : > { %806 = vmatpush.msk.msra.mxu3 %vm410_vm1, %v1006_v15  ;;  %598 = vmatmul.f32.vlgmr.msra.gmra.mxu2 %v535_v31  ;;  %vm415_vm4 = vmor %vm281_vm12, %vm351_vm13  ;;  %vm344_vm12 = vcmp.eq.s32.totalorder %v1139_v1, %v1176_v16 }
  0x71   : > { %618 = vmatmul.f32.vlgmr.msra.gmra.mxu3 %v535_v31  ;;  %756 = vmatpush.msk.msra.mxu0 %vm415_vm4, %v1006_v15  ;;  %vm416_vm7 = vmor %vm282_vm15, %vm352_vm0 }
  0x72   : > { %772 = vmatpush.msk.msra.mxu1 %vm416_vm7, %v1006_v15  ;;  %vm411_vm10 = vmor %vm277_vm2, %vm347_vm3 }
  0x73   : > { %757 = vmatpush.msk.msra.mxu0 %vm411_vm10, %v1006_v15  ;;  %vm412_vm13 = vmor %vm278_vm5, %vm348_vm6 }
  0x74   : > { %773 = vmatpush.msk.msra.mxu1 %vm412_vm13, %v1006_v15  ;;  %vm407_vm14 = vmor %vm273_vm8, %vm343_vm9 }
  0x75   : > { %758 = vmatpush.msk.msra.mxu0 %vm407_vm14, %v1006_v15  ;;  %vm408_vm15 = vmor %vm274_vm11, %vm344_vm12 }
  0x76   : > { %774 = vmatpush.msk.msra.mxu1 %vm408_vm15, %v1006_v15  ;;  %558 = vmatmul.f32.vlgmr.msra.gmra.mxu0 %v535_v31 }
  0x77   : > { %578 = vmatmul.f32.vlgmr.msra.gmra.mxu1 %v535_v31 }
  0xa2   : > { %v540_v32 = vpop.permute.xlu0 %539 }
  0xf3   : > { %v559_v33 = vpop.f32.mrf.mxu0  ;;  %v599_v34 = vpop.f32.mrf.mxu2 }
  0xf4   : > { %v560_v35 = vadd.f32 %v559_v33, %v540_v32  ;;  %v579_v36 = vpop.f32.mrf.mxu1  ;;  %v600_v37 = vadd.f32 %v599_v34, %v540_v32  ;;  %v619_v38 = vpop.f32.mrf.mxu3 }
  0xf5   : > { %v580_v39 = vadd.f32 %v579_v36, %v540_v32  ;;  %v620_v40 = vadd.f32 %v619_v38, %v540_v32 }
  0xf6   : > { %622 = vst [vmem:[%s243_s10] sm:$0xff] %v560_v35 }
  0xf7   : > { %623 = vst [vmem:[%s243_s10 + $0x8] sm:$0xff] %v580_v39 }
  0xf8   : > { %624 = vst [vmem:[%s243_s10 + $0x10] sm:$0xff] %v600_v37 }
  0xf9   : > { %625 = vst [vmem:[%s243_s10 + $0x18] sm:$0xff] %v620_v40 }
  0xfa   : > { %960 = shalt.err (!%p957_p12)
}
  0xfb   : > { %819 = dma.vmem_to_hbm [thread:$0]  (%p1099_p3), %s641_s11, 512, %s643_s12, %s627_s19  }
  0xfc PF: > { %s654_s8 = sand.u32 1, %s991_s15   ;;  %p1567_p13 = scmp.ge.s32.totalorder %s1003_s18, 2 }
  0xfd   : > { %s655_s25 = scalar_lea.sflag [#allocation4], %s654_s8 }
  0xfe   : > { %p830_p0 = pnand %p1567_p13, %p1068_p6 }
 0x100   : > { %p831_p5 = pneg %p830_p0 }
 0x102   : > { %986 = dma.done.wait (%p831_p5), %s655_s25, 512  }
 0x103   : > { %988 = vsyncadd (%p831_p5), %s655_s25, 4294966784  ;;  %p18_p7 = scmp.ge.s32.totalorder %s1086_s29, 4   ;;  %s1568_s15 = smov %s995_s16 }
 0x104   : > { %s1569_s16 = smov %s999_s17  ;;  %s1570_s17 = smov %s1095_s6 }
 0x105   : > { %s1571_s18 = smov %s1086_s29  ;;  %20 = sbr.rel (!%p18_p7) target bundleno = 6 (0x6), region = 88 }
 0x10a   :  { %661 = vsyncpa [#allocation3], 1 }
 0x10b   :  { %663 = vsyncpa [#allocation3 + $0x1], 1 }
 0x10c   :  { %664 = vsyncpa [#allocation6], 1 }
 0x10d   :  { %665 = vsyncpa [#allocation4], 1 }
 0x10e   :  { %667 = vsyncpa [#allocation4 + $0x1], 1 }

</bundles_post_ra>
